<compile_context>
chip_gen: v5e
topology: v5e:2x2
jax: 0.10.0
libtpu: 0.0.40
codegen_flags: <defaults>
</compile_context>

<pallas_src>
import functools

import jax
import jax.numpy as jnp
from jax.experimental import pallas as pl
from jax.experimental.pallas import tpu as pltpu


def _round_up(v, m):
    return (v + m - 1) // m * m


# ----------------------------------------------------------------------------
# Kernel
# ----------------------------------------------------------------------------
def _graph_signature_kernel(
    x_ref,      # [N_pad, Fin_pad] f32   (resident)
    adj_ref,    # [TM, N_pad]      bf16  (streamed row tile of A_hat)
    wg_ref,     # [Fin_pad, C2_pad] f32  (resident)
    bg_ref,     # [1, C2_pad]      f32   (resident)
    wh_ref,     # [C2_pad, H_pad]  f32   (resident, fused FC1..FC4)
    bh_ref,     # [1, H_pad]       f32   (resident, fused biases)
    out_ref,    # [1, H_pad]       f32   (written on last grid step)
    xw_ref,     # scratch VMEM [N_pad, C2_pad] bf16
    s_ref,      # scratch VMEM [1, C2_pad] f32 accumulator
    *,
    n_valid,
    tile_rows,
):
    i = pl.program_id(0)

    # --- once: xw = x @ W_gcn (f32 accumulate, cached as bf16), zero s ------
    @pl.when(i == 0)
    def _():
        xw = jnp.dot(x_ref[...], wg_ref[...], preferred_element_type=jnp.float32)
        xw_ref[...] = xw.astype(xw_ref.dtype)
        s_ref[...] = jnp.zeros_like(s_ref)

    # --- per row tile: h = relu(A_hat[rows] @ xw + bg); accumulate sum ------
    h = jnp.dot(adj_ref[...], xw_ref[...], preferred_element_type=jnp.float32)
    h = jnp.maximum(h + bg_ref[...], 0.0)
    # Mask out zero-padded rows: their contribution would otherwise be
    # relu(bias) per padded row, corrupting the node-sum.
    row_ids = i * tile_rows + jax.lax.broadcasted_iota(jnp.int32, (tile_rows, 1), 0)
    h = jnp.where(row_ids < n_valid, h, 0.0)
    s_ref[...] += jnp.sum(h, axis=0, keepdims=True)

    # --- last step: fused FiLM heads, one GEMM + one tanh -------------------
    @pl.when(i == pl.num_programs(0) - 1)
    def _():
        out_ref[...] = jnp.tanh(
            jnp.dot(s_ref[...], wh_ref[...], preferred_element_type=jnp.float32)
            + bh_ref[...]
        )


# ----------------------------------------------------------------------------
# Plain-JAX glue
# ----------------------------------------------------------------------------
def build_normalized_adjacency(edge_index, num_nodes):
    """Dense D^-1/2 (A + I) D^-1/2 from a [2, E] edge_index."""
    src, dst = edge_index[0], edge_index[1]
    a = jnp.zeros((num_nodes, num_nodes), jnp.float32)
    a = a.at[src, dst].set(1.0)
    a = a.at[dst, src].set(1.0)                       # symmetrize
    a = a + jnp.eye(num_nodes, dtype=jnp.float32)     # add self-loops
    deg = jnp.sum(a, axis=1)
    d_inv_sqrt = jnp.where(deg > 0, 1.0 / jnp.sqrt(deg), 0.0)
    return d_inv_sqrt[:, None] * a * d_inv_sqrt[None, :]


def prepare_signature_params(params):
    """One-time packing: fuse the 4 FC heads, transpose to [in,out], pad to 128 lanes."""
    wg = params["conv1.weight"]            # [Fin, 2C]
    bg = params["conv1.bias"]              # [2C]
    fin, two_c = wg.shape
    c = params["fc3.weight"].shape[0]

    # Fused heads: [2C, 6C] = [W1.T | W2.T | W3.T | W4.T]
    wh = jnp.concatenate(
        [params["fc1.weight"].T, params["fc2.weight"].T,
         params["fc3.weight"].T, params["fc4.weight"].T], axis=1)
    bh = jnp.concatenate(
        [params["fc1.bias"], params["fc2.bias"],
         params["fc3.bias"], params["fc4.bias"]], axis=0)
    h_out = wh.shape[1]                    # 6C

    fin_pad = _round_up(fin, 128)
    c2_pad = _round_up(two_c, 128)
    h_pad = _round_up(h_out, 128)

    wg_p = jnp.zeros((fin_pad, c2_pad), jnp.float32).at[:fin, :two_c].set(wg)
    bg_p = jnp.zeros((1, c2_pad), jnp.float32).at[0, :two_c].set(bg)
    wh_p = jnp.zeros((c2_pad, h_pad), jnp.float32).at[:two_c, :h_out].set(wh)
    bh_p = jnp.zeros((1, h_pad), jnp.float32).at[0, :h_out].set(bh)

    return {
        "wg": wg_p, "bg": bg_p, "wh": wh_p, "bh": bh_p,
        "fin": fin, "two_c": two_c, "c": c,
        "fin_pad": fin_pad, "c2_pad": c2_pad, "h_pad": h_pad,
    }


def graph_signature(x, edge_index, packed, *, tile_rows=512):
    """x: [N, Fin] f32; edge_index: [2, E] i32; packed: prepare_signature_params()."""
    n, fin = x.shape
    fin_pad = packed["fin_pad"]
    c2_pad = packed["c2_pad"]
    h_pad = packed["h_pad"]
    two_c = packed["two_c"]
    c = packed["c"]

    # Row-tile size: multiple of 8 sublanes, adapted to tiny graphs.
    tm = min(tile_rows, _round_up(n, 8))
    n_pad = _round_up(n, tm)
    grid = (n_pad // tm,)

    adj = build_normalized_adjacency(edge_index, n)
    adj_p = (jnp.zeros((n_pad, n_pad), jnp.bfloat16)
             .at[:n, :n].set(adj.astype(jnp.bfloat16)))
    x_p = jnp.zeros((n_pad, fin_pad), jnp.float32).at[:n, :fin].set(x)

    kernel = functools.partial(_graph_signature_kernel, n_valid=n, tile_rows=tm)

    out = pl.pallas_call(
        kernel,
        out_shape=jax.ShapeDtypeStruct((1, h_pad), jnp.float32),
        grid_spec=pltpu.PrefetchScalarGridSpec(
            num_scalar_prefetch=0,
            grid=grid,
            in_specs=[
                pl.BlockSpec((n_pad, fin_pad), lambda i: (0, 0)),   # x (resident)
                pl.BlockSpec((tm, n_pad), lambda i: (i, 0)),        # adj row tile
                pl.BlockSpec((fin_pad, c2_pad), lambda i: (0, 0)),  # W_gcn
                pl.BlockSpec((1, c2_pad), lambda i: (0, 0)),        # b_gcn
                pl.BlockSpec((c2_pad, h_pad), lambda i: (0, 0)),    # fused W heads
                pl.BlockSpec((1, h_pad), lambda i: (0, 0)),         # fused b heads
            ],
            out_specs=pl.BlockSpec((1, h_pad), lambda i: (0, 0)),
            scratch_shapes=[
                pltpu.VMEM((n_pad, c2_pad), jnp.bfloat16),   # cached xw
                pltpu.VMEM((1, c2_pad), jnp.float32),        # node-sum accumulator
            ],
        ),
        compiler_params=pltpu.CompilerParams(
            dimension_semantics=("arbitrary",),      # reduction over row tiles
            vmem_limit_bytes=48 * 1024 * 1024,       # safe on v5e/v6e/v7x
        ),
    )(x_p, adj_p, packed["wg"], packed["bg"], packed["wh"], packed["bh"])

    out = out[0]
    gamma1 = out[:two_c]
    beta1 = out[two_c:2 * two_c]
    gamma2 = out[2 * two_c:2 * two_c + c]
    beta2 = out[2 * two_c + c:2 * two_c + 2 * c]
    return gamma1, beta1, gamma2, beta2


# ----------------------------------------------------------------------------
# Reference (pure JAX) + synthetic params
# ----------------------------------------------------------------------------
def graph_signature_ref(x, edge_index, params):
    adj = build_normalized_adjacency(edge_index, x.shape[0])
    h = jnp.maximum(adj @ (x @ params["conv1.weight"]) + params["conv1.bias"], 0.0)
    s = h.sum(0)
    g1 = jnp.tanh(s @ params["fc1.weight"].T + params["fc1.bias"])
    b1 = jnp.tanh(s @ params["fc2.weight"].T + params["fc2.bias"])
    g2 = jnp.tanh(s @ params["fc3.weight"].T + params["fc3.bias"])
    b2 = jnp.tanh(s @ params["fc4.weight"].T + params["fc4.bias"])
    return g1, b1, g2, b2


def init_params(key, in_channels, out_channels):
    """Deterministic synthetic parameters matching the module's shapes."""
    two_c = 2 * out_channels
    ks = jax.random.split(key, 10)

    def glorot(k, shape):
        fan_in, fan_out = shape[-1], shape[0]
        lim = jnp.sqrt(6.0 / (fan_in + fan_out))
        return jax.random.uniform(k, shape, jnp.float32, -lim, lim)

    return {
        # MetaGCNConv weight is [in_channels, 2*out_channels], applied as x @ W
        "conv1.weight": glorot(ks[0], (in_channels, two_c)),
        "conv1.bias": jnp.zeros((two_c,), jnp.float32),
        # nn.Linear weights are [out, in] (PyTorch convention)
        "fc1.weight": glorot(ks[1], (two_c, two_c)),
        "fc1.bias": 0.01 * jax.random.normal(ks[2], (two_c,), jnp.float32),
        "fc2.weight": glorot(ks[3], (two_c, two_c)),
        "fc2.bias": 0.01 * jax.random.normal(ks[4], (two_c,), jnp.float32),
        "fc3.weight": glorot(ks[5], (out_channels, two_c)),
        "fc3.bias": 0.01 * jax.random.normal(ks[6], (out_channels,), jnp.float32),
        "fc4.weight": glorot(ks[7], (out_channels, two_c)),
        "fc4.bias": 0.01 * jax.random.normal(ks[8], (out_channels,), jnp.float32),
    }


if __name__ == "__main__":
    key = jax.random.PRNGKey(0)
    k_x, k_p = jax.random.split(key)

    num_nodes = 16
    in_channels = 8
    out_channels = 16     # -> 2*out_channels = 32

    x = jax.random.normal(k_x, (num_nodes, in_channels), jnp.float32)
    # deterministic ring graph
    src = jnp.arange(num_nodes, dtype=jnp.int32)
    dst = (src + 1) % num_nodes
    edge_index = jnp.stack([src, dst], axis=0)

    params = init_params(k_p, in_channels, out_channels)
    packed = prepare_signature_params(params)   # one-time packing (hoisted)

    gamma1, beta1, gamma2, beta2 = graph_signature(x, edge_index, packed)
    jax.block_until_ready((gamma1, beta1, gamma2, beta2))

    assert gamma1.shape == (2 * out_channels,)
    assert beta1.shape == (2 * out_channels,)
    assert gamma2.shape == (out_channels,)
    assert beta2.shape == (out_channels,)

    # Sanity-check against the pure-JAX reference (bf16 adjacency -> loose tol).
    r1, r2, r3, r4 = graph_signature_ref(x, edge_index, params)
    max_err = max(
        float(jnp.max(jnp.abs(gamma1 - r1))),
        float(jnp.max(jnp.abs(beta1 - r2))),
        float(jnp.max(jnp.abs(gamma2 - r3))),
        float(jnp.max(jnp.abs(beta2 - r4))),
    )
    assert max_err < 0.1, f"max abs error {max_err} too large"

    print("KERNEL_OK")
</pallas_src>

<mosaic_0001>
module attributes {stable_mosaic.version = 11 : i64} {
  func.func @_graph_signature_kernel(%arg0: i32, %arg1: memref<16x128xf32, #tpu.memory_space<vmem>>, %arg2: memref<16x16xbf16, #tpu.memory_space<vmem>>, %arg3: memref<128x128xf32, #tpu.memory_space<vmem>>, %arg4: memref<1x128xf32, #tpu.memory_space<vmem>>, %arg5: memref<128x128xf32, #tpu.memory_space<vmem>>, %arg6: memref<1x128xf32, #tpu.memory_space<vmem>>, %arg7: memref<1x128xf32, #tpu.memory_space<vmem>>, %arg8: memref<16x128xbf16, #tpu.memory_space<vmem>>, %arg9: memref<1x128xf32, #tpu.memory_space<vmem>>) attributes {dimension_semantics = [#tpu.dimension_semantics<arbitrary>], iteration_bounds = array<i64: 1>, scalar_prefetch = 0 : i64, scratch_operands = 2 : i64, tpu.core_type = #tpu.core_type<tc>, window_params = [{pipeline_mode = #tpu.pipeline_mode<synchronous>, transform_indices = @transform_0, window_bounds = array<i64: 16, 128>}, {transform_indices = @transform_1, window_bounds = array<i64: 16, 16>}, {pipeline_mode = #tpu.pipeline_mode<synchronous>, transform_indices = @transform_2, window_bounds = array<i64: 128, 128>}, {pipeline_mode = #tpu.pipeline_mode<synchronous>, transform_indices = @transform_3, window_bounds = array<i64: 1, 128>}, {pipeline_mode = #tpu.pipeline_mode<synchronous>, transform_indices = @transform_4, window_bounds = array<i64: 128, 128>}, {pipeline_mode = #tpu.pipeline_mode<synchronous>, transform_indices = @transform_5, window_bounds = array<i64: 1, 128>}, {pipeline_mode = #tpu.pipeline_mode<synchronous>, transform_indices = @transform_6, window_bounds = array<i64: 1, 128>}]} {
    %c0_i32 = arith.constant 0 : i32
    %0 = arith.cmpi eq, %arg0, %c0_i32 : i32
    %1 = arith.extui %0 : i1 to i32
    %c0_i32_0 = arith.constant 0 : i32
    %2 = arith.cmpi ne, %1, %c0_i32_0 : i32
    scf.if %2 {
      %c0_16 = arith.constant 0 : index
      %c0_17 = arith.constant 0 : index
      %29 = vector.load %arg1[%c0_16, %c0_17] : memref<16x128xf32, #tpu.memory_space<vmem>>, vector<16x128xf32>
      %c0_18 = arith.constant 0 : index
      %c0_19 = arith.constant 0 : index
      %30 = vector.load %arg3[%c0_18, %c0_19] : memref<128x128xf32, #tpu.memory_space<vmem>>, vector<128x128xf32>
      %cst_20 = arith.constant dense<0.000000e+00> : vector<16x128xf32>
      %31 = tpu.matmul %29, %30, %cst_20 {dimension_numbers = #tpu.dot_dimension_numbers<[1], [0], [0], [1], [0, 0, 1, 1], [], []>} : vector<16x128xf32>, vector<128x128xf32>, vector<16x128xf32> -> vector<16x128xf32>
      %32 = arith.truncf %31 : vector<16x128xf32> to vector<16x128xbf16>
      %c0_21 = arith.constant 0 : index
      %c0_22 = arith.constant 0 : index
      %33 = vector.load %arg8[%c0_21, %c0_22] : memref<16x128xbf16, #tpu.memory_space<vmem>>, vector<16x128xbf16>
      tpu.vector_store %arg8[%c0_21, %c0_22], %32 {strides = array<i32>} : memref<16x128xbf16, #tpu.memory_space<vmem>>, vector<16x128xbf16>,
      %cst_23 = arith.constant 0.000000e+00 : f32
      %34 = vector.broadcast %cst_23 : f32 to vector<1x128xf32>
      %c0_24 = arith.constant 0 : index
      %c0_25 = arith.constant 0 : index
      %35 = vector.load %arg9[%c0_24, %c0_25] : memref<1x128xf32, #tpu.memory_space<vmem>>, vector<1x128xf32>
      tpu.vector_store %arg9[%c0_24, %c0_25], %34 {strides = array<i32>} : memref<1x128xf32, #tpu.memory_space<vmem>>, vector<1x128xf32>,
    } else {
    }
    %c0 = arith.constant 0 : index
    %c0_1 = arith.constant 0 : index
    %3 = vector.load %arg2[%c0, %c0_1] : memref<16x16xbf16, #tpu.memory_space<vmem>>, vector<16x16xbf16>
    %c0_2 = arith.constant 0 : index
    %c0_3 = arith.constant 0 : index
    %4 = vector.load %arg8[%c0_2, %c0_3] : memref<16x128xbf16, #tpu.memory_space<vmem>>, vector<16x128xbf16>
    %cst = arith.constant dense<0.000000e+00> : vector<16x128xf32>
    %5 = tpu.matmul %3, %4, %cst {dimension_numbers = #tpu.dot_dimension_numbers<[1], [0], [0], [1], [0, 0, 1, 1], [], []>} : vector<16x16xbf16>, vector<16x128xbf16>, vector<16x128xf32> -> vector<16x128xf32>
    %c0_4 = arith.constant 0 : index
    %c0_5 = arith.constant 0 : index
    %6 = vector.load %arg4[%c0_4, %c0_5] : memref<1x128xf32, #tpu.memory_space<vmem>>, vector<1x128xf32>
    %7 = vector.broadcast %6 : vector<1x128xf32> to vector<16x128xf32>
    %8 = arith.addf %5, %7 : vector<16x128xf32>
    %cst_6 = arith.constant 0.000000e+00 : f32
    %9 = vector.broadcast %cst_6 : f32 to vector<16x128xf32>
    %10 = arith.maximumf %8, %9 : vector<16x128xf32>
    %c16_i32 = arith.constant 16 : i32
    %11 = arith.muli %arg0, %c16_i32 : i32
    %12 = tpu.iota {dimensions = array<i32: 0>} : vector<16x1xi32>
    %13 = vector.broadcast %11 : i32 to vector<16x1xi32>
    %14 = arith.addi %13, %12 : vector<16x1xi32>
    %c16_i32_7 = arith.constant 16 : i32
    %15 = vector.broadcast %c16_i32_7 : i32 to vector<16x1xi32>
    %16 = arith.cmpi slt, %14, %15 : vector<16x1xi32>
    %cst_8 = arith.constant 0.000000e+00 : f32
    %17 = vector.shape_cast %16 : vector<16x1xi1> to vector<16x1xi1>
    %18 = vector.broadcast %17 : vector<16x1xi1> to vector<16x128xi1>
    %19 = vector.broadcast %cst_8 : f32 to vector<16x128xf32>
    %20 = arith.select %18, %10, %19 : vector<16x128xi1>, vector<16x128xf32>
    %c0_9 = arith.constant 0 : index
    %c0_10 = arith.constant 0 : index
    %21 = vector.load %arg9[%c0_9, %c0_10] : memref<1x128xf32, #tpu.memory_space<vmem>>, vector<1x128xf32>
    %cst_11 = arith.constant dense<0.000000e+00> : vector<128xf32>
    %22 = vector.multi_reduction <add>, %20, %cst_11 [0] : vector<16x128xf32> to vector<128xf32>
    %23 = vector.shape_cast %22 : vector<128xf32> to vector<1x128xf32>
    %24 = arith.addf %21, %23 : vector<1x128xf32>
    %c0_12 = arith.constant 0 : index
    %c0_13 = arith.constant 0 : index
    %25 = vector.load %arg9[%c0_12, %c0_13] : memref<1x128xf32, #tpu.memory_space<vmem>>, vector<1x128xf32>
    tpu.vector_store %arg9[%c0_12, %c0_13], %24 {strides = array<i32>} : memref<1x128xf32, #tpu.memory_space<vmem>>, vector<1x128xf32>,
    %c0_i32_14 = arith.constant 0 : i32
    %26 = arith.cmpi eq, %arg0, %c0_i32_14 : i32
    %27 = arith.extui %26 : i1 to i32
    %c0_i32_15 = arith.constant 0 : i32
    %28 = arith.cmpi ne, %27, %c0_i32_15 : i32
    scf.if %28 {
      %c0_16 = arith.constant 0 : index
      %c0_17 = arith.constant 0 : index
      %29 = vector.load %arg9[%c0_16, %c0_17] : memref<1x128xf32, #tpu.memory_space<vmem>>, vector<1x128xf32>
      %c0_18 = arith.constant 0 : index
      %c0_19 = arith.constant 0 : index
      %30 = vector.load %arg5[%c0_18, %c0_19] : memref<128x128xf32, #tpu.memory_space<vmem>>, vector<128x128xf32>
      %cst_20 = arith.constant dense<0.000000e+00> : vector<1x128xf32>
      %31 = tpu.matmul %29, %30, %cst_20 {dimension_numbers = #tpu.dot_dimension_numbers<[1], [0], [0], [1], [0, 0, 1, 1], [], []>} : vector<1x128xf32>, vector<128x128xf32>, vector<1x128xf32> -> vector<1x128xf32>
      %c0_21 = arith.constant 0 : index
      %c0_22 = arith.constant 0 : index
      %32 = vector.load %arg6[%c0_21, %c0_22] : memref<1x128xf32, #tpu.memory_space<vmem>>, vector<1x128xf32>
      %33 = arith.addf %31, %32 : vector<1x128xf32>
      %34 = math.tanh %33 : vector<1x128xf32>
      %c0_23 = arith.constant 0 : index
      %c0_24 = arith.constant 0 : index
      %35 = vector.load %arg7[%c0_23, %c0_24] : memref<1x128xf32, #tpu.memory_space<vmem>>, vector<1x128xf32>
      tpu.vector_store %arg7[%c0_23, %c0_24], %34 {strides = array<i32>} : memref<1x128xf32, #tpu.memory_space<vmem>>, vector<1x128xf32>,
    } else {
    }
    return
  }
  func.func @transform_0(%arg0: i32) -> (i32, i32) {
    %c0_i32 = arith.constant 0 : i32
    %c0_i32_0 = arith.constant 0 : i32
    %c0_i32_1 = arith.constant 0 : i32
    return %c0_i32, %c0_i32_0 : i32, i32
  }
  func.func @transform_1(%arg0: i32) -> (i32, i32) {
    %c0_i32 = arith.constant 0 : i32
    %c0_i32_0 = arith.constant 0 : i32
    return %arg0, %c0_i32 : i32, i32
  }
  func.func @transform_2(%arg0: i32) -> (i32, i32) {
    %c0_i32 = arith.constant 0 : i32
    %c0_i32_0 = arith.constant 0 : i32
    %c0_i32_1 = arith.constant 0 : i32
    return %c0_i32, %c0_i32_0 : i32, i32
  }
  func.func @transform_3(%arg0: i32) -> (i32, i32) {
    %c0_i32 = arith.constant 0 : i32
    %c0_i32_0 = arith.constant 0 : i32
    %c0_i32_1 = arith.constant 0 : i32
    return %c0_i32, %c0_i32_0 : i32, i32
  }
  func.func @transform_4(%arg0: i32) -> (i32, i32) {
    %c0_i32 = arith.constant 0 : i32
    %c0_i32_0 = arith.constant 0 : i32
    %c0_i32_1 = arith.constant 0 : i32
    return %c0_i32, %c0_i32_0 : i32, i32
  }
  func.func @transform_5(%arg0: i32) -> (i32, i32) {
    %c0_i32 = arith.constant 0 : i32
    %c0_i32_0 = arith.constant 0 : i32
    %c0_i32_1 = arith.constant 0 : i32
    return %c0_i32, %c0_i32_0 : i32, i32
  }
  func.func @transform_6(%arg0: i32) -> (i32, i32) {
    %c0_i32 = arith.constant 0 : i32
    %c0_i32_0 = arith.constant 0 : i32
    %c0_i32_1 = arith.constant 0 : i32
    return %c0_i32, %c0_i32_0 : i32, i32
  }
}

</mosaic_0001>

<bundles_post_ra>
// kernel: tpu_custom_call.1
= control target key start
LH: loop header
LB: loop body
LE: loop exit
PB: predicated region body
PF: predicated region fallthrough
CT: control target
= control target key end

     0   :  { %11 = vsyncpa [#allocation5], 0  ;;  %s503_s0 = inlined_call_operand.hbm [shape: f32[16,128], index: 0, kind: input, shape index: {}]   ;;  %s504_s1 = inlined_call_operand.hbm [shape: bf16[16,16], index: 1, kind: input, shape index: {}]   ;;  %s505_s2 = inlined_call_operand.hbm [shape: f32[128,128], index: 2, kind: input, shape index: {}]   ;;  %s506_s3 = inlined_call_operand.vmem [shape: f32[1,128], index: 3, kind: input, shape index: {}]   ;;  %s507_s4 = inlined_call_operand.hbm [shape: f32[128,128], index: 4, kind: input, shape index: {}]   ;;  %s508_s5 = inlined_call_operand.vmem [shape: f32[1,128], index: 5, kind: input, shape index: {}]   ;;  %s509_s6 = inlined_call_operand.hbm [shape: f32[1,128], index: 6, kind: output, shape index: {}]  }
   0x1   :  { %12 = vsyncpa [#allocation8], 0 }
   0x2   :  { %13 = vsyncpa [#allocation11], 0  ;;  %s32_s23 = sshll.u32 %s504_s1, 4  ;;  %s33_s23 = int_to_ptr.hbm [resolvable:$true] %s32_s23 }
   0x3   :  { %14 = vsyncpa [#allocation6], 0  ;;  %s437_s24 = smov [#allocation7]   ;;  %s19_s28 = sshll.u32 %s503_s0, 4  ;;  %s20_s28 = int_to_ptr.hbm [resolvable:$true] %s19_s28 }
   0x4   :  { %s34_s25 = sshll.u32 %s437_s24, 4  ;;  %s438_s29 = smov 64   ;;  %s35_s25 = int_to_ptr.vmem [resolvable:$true] %s34_s25 }
   0x5   :  { %s439_s30 = smov 4   ;;  %s440_s7 = smov [#allocation4]  }
   0x6   :  { %40 = dma.hbm_to_vmem [thread:$0]  %s33_s23, 128, %s35_s25, [#allocation8], %s438_s29, %s438_s29, %s439_s30  }
   0x7   :  { %s21_s8 = sshll.u32 %s440_s7, 4  ;;  %s441_s9 = smov 128   ;;  %s22_s8 = int_to_ptr.vmem [resolvable:$true] %s21_s8 }
   0x8   :  { %s442_s10 = smov 8   ;;  %s45_s12 = sshll.u32 %s505_s2, 4  ;;  %s46_s12 = int_to_ptr.hbm [resolvable:$true] %s45_s12 }
   0x9   :  { %27 = dma.hbm_to_vmem [thread:$0]  %s20_s28, 256, %s22_s8, [#allocation5], %s441_s9, %s441_s9, %s442_s10  }
   0xa   :  { %s443_s13 = smov [#allocation9]   ;;  %s60_s16 = sshll.u32 %s507_s4, 4  ;;  %s61_s16 = int_to_ptr.hbm [resolvable:$true] %s60_s16 }
   0xb   :  { %s47_s14 = sshll.u32 %s443_s13, 4  ;;  %s444_s17 = smov [#allocation10]   ;;  %s48_s14 = int_to_ptr.vmem [resolvable:$true] %s47_s14 }
   0xc   :  { %53 = dma.hbm_to_vmem [thread:$0]  %s46_s12, 2048, %s48_s14, [#allocation8], %s441_s9, %s441_s9, %s442_s10  }
   0xd   :  { %s62_s18 = sshll.u32 %s444_s17, 4  ;;  %s63_s18 = int_to_ptr.vmem [resolvable:$true] %s62_s18 }
   0xe   :  { %68 = dma.hbm_to_vmem [thread:$0]  %s61_s16, 2048, %s63_s18, [#allocation11], %s441_s9, %s441_s9, %s442_s10  }
   0xf   :  { %429 = dma.done.wait [#allocation5], 256  }
  0x10   :  { %430 = vsyncadd [#allocation5], 4294967040 }
  0x11   :  { %431 = dma.done.wait [#allocation8], 2176  }
  0x12   :  { %432 = vsyncadd [#allocation8], 4294965120 }
  0x13   :  { %433 = dma.done.wait [#allocation11], 2048  }
  0x14   :  { %434 = vsyncadd [#allocation11], 4294965248  ;;  %v109_v0 = vld [vmem:[#allocation9 + $0x78] sm:$0xff]  ;;  %v108_v1 = vld [vmem:[#allocation9 + $0x70] sm:$0xff]  ;;  %vm157_vm0 = vcmask 130048   ;;  %v445_v24 = vmov 0.0  }
  0x15   :  { %280 = vmatpush.msra.mxu3 %v109_v0  ;;  %110 = vmatpush.msra.mxu0 %v109_v0  ;;  %v107_v2 = vld [vmem:[#allocation9 + $0x68] sm:$0xff]  ;;  %v106_v3 = vld [vmem:[#allocation9 + $0x60] sm:$0xff]  ;;  %v105_v4 = vld [vmem:[#allocation9 + $0x58] sm:$0xff]  ;;  %137 = vst [vmem:[#allocation3] sm:$0x1] %v445_v24  ;;  %s446_s20 = smov [#allocation12]  }
  0x16   :  { %v104_v5 = vld [vmem:[#allocation9 + $0x50] sm:$0xff]  ;;  %v103_v6 = vld [vmem:[#allocation9 + $0x48] sm:$0xff]  ;;  %v102_v7 = vld [vmem:[#allocation9 + $0x40] sm:$0xff]  ;;  %s250_s21 = sshll.u32 %s446_s20, 4  ;;  %s252_s24 = sshll.u32 %s509_s6, 4  ;;  %s251_s21 = int_to_ptr.vmem [resolvable:$true] %s250_s21  ;;  %s253_s24 = int_to_ptr.hbm [resolvable:$true] %s252_s24 }
  0x17   :  { %281 = vmatpush.msra.mxu3 %v108_v1  ;;  %111 = vmatpush.msra.mxu0 %v108_v1  ;;  %v101_v8 = vld [vmem:[#allocation9 + $0x38] sm:$0xff]  ;;  %v100_v9 = vld [vmem:[#allocation9 + $0x30] sm:$0xff]  ;;  %v99_v10 = vld [vmem:[#allocation9 + $0x28] sm:$0xff] }
  0x18   :  { %v98_v11 = vld [vmem:[#allocation9 + $0x20] sm:$0xff]  ;;  %v97_v12 = vld [vmem:[#allocation9 + $0x18] sm:$0xff]  ;;  %v96_v13 = vld [vmem:[#allocation9 + $0x10] sm:$0xff] }
  0x19   :  { %282 = vmatpush.msra.mxu3 %v107_v2  ;;  %112 = vmatpush.msra.mxu0 %v107_v2  ;;  %v95_v14 = vld [vmem:[#allocation9 + $0x8] sm:$0xff]  ;;  %v94_v15 = vld [vmem:[#allocation9] sm:$0xff]  ;;  %v93_v16 = vld [vmem:[#allocation4 + $0x8] sm:$0xff] }
  0x1a   :  { %v92_v17 = vld [vmem:[#allocation4] sm:$0xff]  ;;  %v273_v22 = vld [vmem:[#allocation7] sm:$0xff]  ;;  %v220_v25 = vld [vmem:[#allocation10 + $0x70] sm:$0xff] }
  0x1b   :  { %283 = vmatpush.msra.mxu3 %v106_v3  ;;  %113 = vmatpush.msra.mxu0 %v106_v3  ;;  %v221_v23 = vld [vmem:[#allocation10 + $0x78] sm:$0xff]  ;;  %v219_v26 = vld [vmem:[#allocation10 + $0x68] sm:$0xff]  ;;  %v218_v27 = vld [vmem:[#allocation10 + $0x60] sm:$0xff] }
  0x1c   :  { %223 = vmatpush.msra.mxu2 %v221_v23  ;;  %v217_v28 = vld [vmem:[#allocation10 + $0x58] sm:$0xff]  ;;  %v216_v29 = vld [vmem:[#allocation10 + $0x50] sm:$0xff]  ;;  %v215_v30 = vld [vmem:[#allocation10 + $0x48] sm:$0xff] }
  0x1d   :  { %284 = vmatpush.msra.mxu3 %v105_v4  ;;  %114 = vmatpush.msra.mxu0 %v105_v4  ;;  %v214_v31 = vld [vmem:[#allocation10 + $0x40] sm:$0xff]  ;;  %v213_v32 = vld [vmem:[#allocation10 + $0x38] sm:$0xff]  ;;  %v212_v33 = vld [vmem:[#allocation10 + $0x30] sm:$0xff] }
  0x1e   :  { %224 = vmatpush.msra.mxu2 %v220_v25  ;;  %v211_v34 = vld [vmem:[#allocation10 + $0x28] sm:$0xff]  ;;  %v210_v35 = vld [vmem:[#allocation10 + $0x20] sm:$0xff]  ;;  %v209_v36 = vld [vmem:[#allocation10 + $0x18] sm:$0xff] }
  0x1f   :  { %285 = vmatpush.msra.mxu3 %v104_v5  ;;  %115 = vmatpush.msra.mxu0 %v104_v5  ;;  %v208_v37 = vld [vmem:[#allocation10 + $0x10] sm:$0xff]  ;;  %v207_v38 = vld [vmem:[#allocation10 + $0x8] sm:$0xff]  ;;  %v206_v40 = vld [vmem:[#allocation10] sm:$0xff] }
  0x20   :  { %225 = vmatpush.msra.mxu2 %v219_v26  ;;  %v306_v41 = vld [vmem:[%s506_s3] ss:$0 sm:$0xff]  ;;  %v192_v53 = vld [vmem:[#allocation3] sm:$0x1] }
  0x21   :  { %286 = vmatpush.msra.mxu3 %v103_v6  ;;  %116 = vmatpush.msra.mxu0 %v103_v6  ;;  %v222_v57 = vld [vmem:[%s508_s5] sm:$0x1] }
  0x22   :  { %226 = vmatpush.msra.mxu2 %v218_v27 }
  0x23   :  { %287 = vmatpush.msra.mxu3 %v102_v7  ;;  %117 = vmatpush.msra.mxu0 %v102_v7 }
  0x24   :  { %227 = vmatpush.msra.mxu2 %v217_v28 }
  0x25   :  { %288 = vmatpush.msra.mxu3 %v101_v8  ;;  %118 = vmatpush.msra.mxu0 %v101_v8 }
  0x26   :  { %228 = vmatpush.msra.mxu2 %v216_v29 }
  0x27   :  { %289 = vmatpush.msra.mxu3 %v100_v9  ;;  %119 = vmatpush.msra.mxu0 %v100_v9 }
  0x28   :  { %229 = vmatpush.msra.mxu2 %v215_v30 }
  0x29   :  { %290 = vmatpush.msra.mxu3 %v99_v10  ;;  %120 = vmatpush.msra.mxu0 %v99_v10 }
  0x2a   :  { %230 = vmatpush.msra.mxu2 %v214_v31 }
  0x2b   :  { %291 = vmatpush.msra.mxu3 %v98_v11  ;;  %121 = vmatpush.msra.mxu0 %v98_v11 }
  0x2c   :  { %231 = vmatpush.msra.mxu2 %v213_v32 }
  0x2d   :  { %292 = vmatpush.msra.mxu3 %v97_v12  ;;  %122 = vmatpush.msra.mxu0 %v97_v12 }
  0x2e   :  { %232 = vmatpush.msra.mxu2 %v212_v33 }
  0x2f   :  { %293 = vmatpush.msra.mxu3 %v96_v13  ;;  %123 = vmatpush.msra.mxu0 %v96_v13 }
  0x30   :  { %233 = vmatpush.msra.mxu2 %v211_v34 }
  0x31   :  { %294 = vmatpush.msra.mxu3 %v95_v14  ;;  %124 = vmatpush.msra.mxu0 %v95_v14 }
  0x32   :  { %234 = vmatpush.msra.mxu2 %v210_v35 }
  0x33   :  { %295 = vmatpush.msra.mxu3 %v94_v15  ;;  %125 = vmatpush.msra.mxu0 %v94_v15 }
  0x34   :  { %129 = vmatmul.f32.vlgmr.msra.gmra.mxu3 %v93_v16  ;;  %126 = vmatmul.f32.vlgmr.msra.gmra.mxu0 %v92_v17 }
  0x35   :  { %235 = vmatpush.msra.mxu2 %v209_v36 }
  0x37   :  { %236 = vmatpush.msra.mxu2 %v208_v37 }
  0x39   :  { %237 = vmatpush.msra.mxu2 %v207_v38 }
  0x3b   :  { %238 = vmatpush.msra.mxu2 %v206_v40 }
  0xb1   :  { %v127_v18 = vpop.f32.mrf.mxu0 }
  0xb7   :  { %v130_v19 = vpop.f32.mrf.mxu3 }
  0xb8   :  { %v278_v20 = vpack.c.bf16 %v130_v19, %v127_v18 }
  0xba   :  { %279 = vst [vmem:[#allocation2] sm:$0xff] %v278_v20  }
  0xc1   :  { %v274_v21 = vld [vmem:[#allocation2] sm:$0xff] }
  0xc2   :  { %168 = vmatpush.bf16.msra.mxu1 %v274_v21 }
  0xc5   :  { %272 = vmatmul.msk.bf16.vlgmr.msra.gmra.mxu1 %vm157_vm0, %v273_v22 }
 0x142   :  { %v170_v39 = vpop.f32.mrf.mxu1 }
 0x143   :  { %v171_v42 = vadd.f32 %v306_v41, %v170_v39 }
 0x145   :  { %v175_v45 = vmax.f32 %v171_v42, 0.0 }
 0x14a   :  { %v172_v43 = vpop.f32.mrf.mxu1 }
 0x14b   :  { %v173_v44 = vadd.f32 %v306_v41, %v172_v43 }
 0x14d   :  { %v176_v46 = vmax.f32 %v173_v44, 0.0 }
 0x14f   :  { %v193_v47 = vadd.f32 %v176_v46, %v175_v45 }
 0x151   :  { %v194_v48 = vrot.slane %v193_v47, 4 }
 0x153   :  { %v195_v49 = vadd.f32 %v194_v48, %v193_v47 }
 0x155   :  { %v196_v50 = vrot.slane %v195_v49, 2 }
 0x157   :  { %v197_v51 = vadd.f32 %v196_v50, %v195_v49 }
 0x159   :  { %v198_v52 = vrot.slane %v197_v51, 1 }
 0x15b   :  { %v199_v54 = vadd.f32 %v198_v52, %v197_v51 }
 0x15d   :  { %v200_v55 = vadd.f32 %v199_v54, %v192_v53 }
 0x15f   :  { %201 = vst [vmem:[#allocation3] sm:$0x1] %v200_v55 }
 0x166   :  { %v205_v56 = vld [vmem:[#allocation3] sm:$0x1] }
 0x167   :  { %239 = vmatmul.f32.vlgmr.msra.gmra.mxu2 %v205_v56 }
 0x1ea   :  { %v240_v58 = vpop.f32.mrf.mxu2 }
 0x1eb   :  { %v241_v59 = vadd.f32 %v240_v58, %v222_v57 }
 0x1ed   :  { %307 = vtanh.f32 %v241_v59 }
 0x1f3   :  { %v308_v60 = vpop.eup %307 }
 0x1f4   :  { %244 = vst [vmem:[#allocation12] sm:$0x1] %v308_v60 }
 0x1f5   :  { %255 = dma.vmem_to_hbm [thread:$0]  %s251_s21, 16, %s253_s24, [#allocation6]  }
 0x1f6   :  { %435 = dma.done.wait [#allocation6], 16  }
 0x1f7   :  { %436 = vsyncadd [#allocation6], 4294967280 }
 0x1f8   :  { %260 = vsyncpa [#allocation5], 1 }
 0x1f9   :  { %261 = vsyncpa [#allocation8], 1 }
 0x1fa   :  { %262 = vsyncpa [#allocation11], 1 }
 0x1fb   :  { %263 = vsyncpa [#allocation6], 1 }

</bundles_post_ra>
